<compile_context>
chip_gen: v6e
topology: v6e:2x2x1
jax: 0.10.0
libtpu: 0.0.40
codegen_flags: <defaults>
</compile_context>

<pallas_src>
import jax
import jax.numpy as jnp
from jax.experimental import pallas as pl
from jax.experimental.pallas import tpu as pltpu

LANES = 128
# 2048 rows x 128 lanes x 4 B = 1 MiB per f32 input block; 2 inputs x 2 pipeline
# buffers = 4 MiB of VMEM -> safe on every generation without vmem_limit_bytes.
MAX_TILE_ROWS = 2048
NUM_CHUNKS = 2  # leading "parallel" grid axis (megacore sharding on v7x)


def _round_up(a, b):
    return pl.cdiv(a, b) * b


def _row_align(dtype):
    # sublane packing requirement: f32 -> 8 rows, bf16/f16 -> 16, int8/uint8 -> 32
    return 8 * max(1, 4 // jnp.dtype(dtype).itemsize)


def dice_loss(inp, tgt, *, max_tile_rows=MAX_TILE_ROWS, num_chunks=NUM_CHUNKS):
    """Pallas TPU implementation of DiceLoss.forward. Returns a scalar f32."""
    assert inp.shape == tgt.shape, "input and target must have the same shape"

    x = jnp.ravel(inp)
    t = jnp.ravel(tgt)
    # bool tensors: cheap widen to int8 so they stream through the kernel (1 B/elem)
    if x.dtype == jnp.bool_:
        x = x.astype(jnp.int8)
    if t.dtype == jnp.bool_:
        t = t.astype(jnp.int8)

    n = x.shape[0]
    align = max(_row_align(x.dtype), _row_align(t.dtype))
    rows = pl.cdiv(n, LANES)

    if rows >= max_tile_rows:
        # Large input: fixed 1 MiB-class tiles; partial row-tiles are masked in-kernel.
        tile_rows = max_tile_rows
        rows_padded = rows
    else:
        # Small input: a single tile covering everything (row pad is tiny here).
        tile_rows = _round_up(max(rows, 1), align)
        rows_padded = tile_rows

    padded_n = rows_padded * LANES
    if padded_n != n:
        # TODO(synk): when n % 128 != 0 a zero-pad copy is unavoidable to obtain a
        # lane-dense (rows, 128) view; it is skipped whenever n is 128-aligned.
        x = jnp.pad(x, (0, padded_n - n))
        t = jnp.pad(t, (0, padded_n - n))

    x2d = x.reshape(rows_padded, LANES)
    t2d = t.reshape(rows_padded, LANES)

    total_tiles = pl.cdiv(rows_padded, tile_rows)
    chunks = num_chunks if total_tiles >= num_chunks else 1
    steps = pl.cdiv(total_tiles, chunks)
    # Rows covered by the grid may exceed the array (partial last tile and/or the
    # excess grid step created by the parallel split) -> mask those rows in-kernel.
    needs_mask = chunks * steps * tile_rows > rows_padded
    valid_rows = rows_padded  # padded lane-tail rows are zeros, safe to include
    sub_tiles = tile_rows // 8

    def kernel(x_ref, t_ref, inter_ref, isq_ref, tsq_ref):
        c = pl.program_id(0)
        j = pl.program_id(1)

        @pl.when(j == 0)
        def _init():
            inter_ref[...] = jnp.zeros_like(inter_ref)
            isq_ref[...] = jnp.zeros_like(isq_ref)
            tsq_ref[...] = jnp.zeros_like(tsq_ref)

        xv = x_ref[...].astype(jnp.float32)
        tv = t_ref[...].astype(jnp.float32)

        def accumulate(xa, ta):
            # (tile_rows, 128) -> (tile_rows//8, 8, 128) is the native layout
            # (free); the axis-0 sums are pure VPU vreg adds into the (8, 128)
            # vector accumulators.  Cross-lane reduction happens once, outside.
            xr = xa.reshape(sub_tiles, 8, LANES)
            tr = ta.reshape(sub_tiles, 8, LANES)
            inter_ref[...] += jnp.sum(xr * tr, axis=0)
            isq_ref[...] += jnp.sum(xr * xr, axis=0)
            tsq_ref[...] += jnp.sum(tr * tr, axis=0)

        if needs_mask:
            base_row = (c * steps + j) * tile_rows

            @pl.when(base_row + tile_rows <= valid_rows)
            def _full():
                accumulate(xv, tv)

            @pl.when(base_row + tile_rows > valid_rows)
            def _masked():
                row_ids = base_row + jax.lax.broadcasted_iota(
                    jnp.int32, (tile_rows, LANES), 0)
                keep = row_ids < valid_rows
                accumulate(jnp.where(keep, xv, 0.0), jnp.where(keep, tv, 0.0))
        else:
            accumulate(xv, tv)

    def in_map(c, j):
        # Clamp so that the (at most chunks-1) excess grid steps created by the
        # parallel split re-read the last real tile; their rows are masked out.
        return (jnp.minimum(c * steps + j, total_tiles - 1), 0)

    def out_map(c, j):
        return (c, 0, 0)

    partial_shape = jax.ShapeDtypeStruct((chunks, 8, LANES), jnp.float32)
    out_block = pl.BlockSpec((None, 8, LANES), out_map)

    inter_p, isq_p, tsq_p = pl.pallas_call(
        kernel,
        out_shape=(partial_shape, partial_shape, partial_shape),
        grid_spec=pltpu.PrefetchScalarGridSpec(
            num_scalar_prefetch=0,
            grid=(chunks, steps),
            in_specs=[
                pl.BlockSpec((tile_rows, LANES), in_map),
                pl.BlockSpec((tile_rows, LANES), in_map),
            ],
            out_specs=[out_block, out_block, out_block],
        ),
        compiler_params=pltpu.CompilerParams(
            dimension_semantics=("parallel", "arbitrary"),
        ),
    )(x2d, t2d)

    smooth = jnp.float32(1.0)
    intersection = jnp.sum(inter_p)
    isum = jnp.sum(isq_p)
    tsum = jnp.sum(tsq_p)
    dice = (2.0 * intersection + smooth) / (isum + tsum + smooth)
    return (1.0 - dice).astype(jnp.float32)


def dice_loss_ref(inp, tgt):
    smooth = 1.0
    x = jnp.ravel(inp).astype(jnp.float32)
    t = jnp.ravel(tgt).astype(jnp.float32)
    inter = jnp.sum(x * t)
    isum = jnp.sum(x * x)
    tsum = jnp.sum(t * t)
    return 1.0 - (2.0 * inter + smooth) / (isum + tsum + smooth)


if __name__ == "__main__":
    key = jax.random.PRNGKey(0)
    k1, k2, k3, k4, k5, k6 = jax.random.split(key, 6)

    # 1) Small NCHW prediction / target (the module flattens them anyway).
    shape = (2, 4, 16, 16)
    pred = jax.nn.sigmoid(jax.random.normal(k1, shape, dtype=jnp.float32))
    target = (jax.random.uniform(k2, shape) > 0.5).astype(jnp.float32)
    out = jax.block_until_ready(dice_loss(pred, target))
    ref = jax.block_until_ready(dice_loss_ref(pred, target))
    assert jnp.allclose(out, ref, rtol=1e-5, atol=1e-6), (out, ref)

    # 2) Exercise the multi-tile / 2-chunk / partial-last-tile / clamped-excess-step
    #    path cheaply by shrinking the tile (49 rows, 7 tiles of 8 rows, 2 chunks).
    shape2 = (2, 7, 448)
    pred2 = jax.nn.sigmoid(jax.random.normal(k3, shape2, dtype=jnp.float32))
    target2 = (jax.random.uniform(k4, shape2) > 0.5).astype(jnp.float32)
    out2 = jax.block_until_ready(dice_loss(pred2, target2, max_tile_rows=8))
    ref2 = jax.block_until_ready(dice_loss_ref(pred2, target2))
    assert jnp.allclose(out2, ref2, rtol=1e-5, atol=1e-6), (out2, ref2)

    # 3) Element count not divisible by 128 (lane-tail zero-pad path).
    shape3 = (3, 5, 40, 40)
    pred3 = jax.nn.sigmoid(jax.random.normal(k5, shape3, dtype=jnp.float32))
    target3 = (jax.random.uniform(k6, shape3) > 0.5).astype(jnp.float32)
    out3 = jax.block_until_ready(dice_loss(pred3, target3))
    ref3 = jax.block_until_ready(dice_loss_ref(pred3, target3))
    assert jnp.allclose(out3, ref3, rtol=1e-5, atol=1e-6), (out3, ref3)

    print("KERNEL_OK")
</pallas_src>

<mosaic_0001>
module attributes {stable_mosaic.version = 11 : i64} {
  func.func @kernel(%arg0: i32, %arg1: i32, %arg2: memref<16x128xf32, #tpu.memory_space<vmem>>, %arg3: memref<16x128xf32, #tpu.memory_space<vmem>>, %arg4: memref<1x8x128xf32, #tpu.memory_space<vmem>>, %arg5: memref<1x8x128xf32, #tpu.memory_space<vmem>>, %arg6: memref<1x8x128xf32, #tpu.memory_space<vmem>>) attributes {dimension_semantics = [#tpu.dimension_semantics<parallel>, #tpu.dimension_semantics<arbitrary>], iteration_bounds = array<i64: 1, 1>, scalar_prefetch = 0 : i64, scratch_operands = 0 : i64, tpu.core_type = #tpu.core_type<tc>, window_params = [{transform_indices = @transform_0, window_bounds = array<i64: 16, 128>}, {transform_indices = @transform_1, window_bounds = array<i64: 16, 128>}, {transform_indices = @transform_2, window_bounds = array<i64: 1, 8, 128>}, {transform_indices = @transform_3, window_bounds = array<i64: 1, 8, 128>}, {transform_indices = @transform_4, window_bounds = array<i64: 1, 8, 128>}]} {
    %c0_i32 = arith.constant 0 : i32
    %0 = arith.cmpi eq, %arg1, %c0_i32 : i32
    %1 = arith.extui %0 : i1 to i32
    %c0_i32_0 = arith.constant 0 : i32
    %2 = arith.cmpi ne, %1, %c0_i32_0 : i32
    scf.if %2 {
      %cst_24 = arith.constant 0.000000e+00 : f32
      %31 = vector.broadcast %cst_24 : f32 to vector<8x128xf32>
      %c0_25 = arith.constant 0 : index
      %c0_26 = arith.constant 0 : index
      %c0_27 = arith.constant 0 : index
      %32 = vector.load %arg4[%c0_25, %c0_26, %c0_27] : memref<1x8x128xf32, #tpu.memory_space<vmem>>, vector<1x8x128xf32>
      %33 = vector.shape_cast %32 : vector<1x8x128xf32> to vector<8x128xf32>
      %34 = vector.shape_cast %31 : vector<8x128xf32> to vector<1x8x128xf32>
      tpu.vector_store %arg4[%c0_25, %c0_26, %c0_27], %34 {strides = array<i32>} : memref<1x8x128xf32, #tpu.memory_space<vmem>>, vector<1x8x128xf32>,
      %cst_28 = arith.constant 0.000000e+00 : f32
      %35 = vector.broadcast %cst_28 : f32 to vector<8x128xf32>
      %c0_29 = arith.constant 0 : index
      %c0_30 = arith.constant 0 : index
      %c0_31 = arith.constant 0 : index
      %36 = vector.load %arg5[%c0_29, %c0_30, %c0_31] : memref<1x8x128xf32, #tpu.memory_space<vmem>>, vector<1x8x128xf32>
      %37 = vector.shape_cast %36 : vector<1x8x128xf32> to vector<8x128xf32>
      %38 = vector.shape_cast %35 : vector<8x128xf32> to vector<1x8x128xf32>
      tpu.vector_store %arg5[%c0_29, %c0_30, %c0_31], %38 {strides = array<i32>} : memref<1x8x128xf32, #tpu.memory_space<vmem>>, vector<1x8x128xf32>,
      %cst_32 = arith.constant 0.000000e+00 : f32
      %39 = vector.broadcast %cst_32 : f32 to vector<8x128xf32>
      %c0_33 = arith.constant 0 : index
      %c0_34 = arith.constant 0 : index
      %c0_35 = arith.constant 0 : index
      %40 = vector.load %arg6[%c0_33, %c0_34, %c0_35] : memref<1x8x128xf32, #tpu.memory_space<vmem>>, vector<1x8x128xf32>
      %41 = vector.shape_cast %40 : vector<1x8x128xf32> to vector<8x128xf32>
      %42 = vector.shape_cast %39 : vector<8x128xf32> to vector<1x8x128xf32>
      tpu.vector_store %arg6[%c0_33, %c0_34, %c0_35], %42 {strides = array<i32>} : memref<1x8x128xf32, #tpu.memory_space<vmem>>, vector<1x8x128xf32>,
    } else {
    }
    %c0 = arith.constant 0 : index
    %c0_1 = arith.constant 0 : index
    %3 = vector.load %arg2[%c0, %c0_1] : memref<16x128xf32, #tpu.memory_space<vmem>>, vector<16x128xf32>
    %c0_2 = arith.constant 0 : index
    %c0_3 = arith.constant 0 : index
    %4 = vector.load %arg3[%c0_2, %c0_3] : memref<16x128xf32, #tpu.memory_space<vmem>>, vector<16x128xf32>
    %5 = vector.shape_cast %3 : vector<16x128xf32> to vector<2x8x128xf32>
    %6 = vector.shape_cast %4 : vector<16x128xf32> to vector<2x8x128xf32>
    %c0_4 = arith.constant 0 : index
    %c0_5 = arith.constant 0 : index
    %c0_6 = arith.constant 0 : index
    %7 = vector.load %arg4[%c0_4, %c0_5, %c0_6] : memref<1x8x128xf32, #tpu.memory_space<vmem>>, vector<1x8x128xf32>
    %8 = vector.shape_cast %7 : vector<1x8x128xf32> to vector<8x128xf32>
    %9 = arith.mulf %5, %6 : vector<2x8x128xf32>
    %cst = arith.constant dense<0.000000e+00> : vector<8x128xf32>
    %10 = vector.multi_reduction <add>, %9, %cst [0] : vector<2x8x128xf32> to vector<8x128xf32>
    %11 = arith.addf %8, %10 : vector<8x128xf32>
    %c0_7 = arith.constant 0 : index
    %c0_8 = arith.constant 0 : index
    %c0_9 = arith.constant 0 : index
    %12 = vector.load %arg4[%c0_7, %c0_8, %c0_9] : memref<1x8x128xf32, #tpu.memory_space<vmem>>, vector<1x8x128xf32>
    %13 = vector.shape_cast %12 : vector<1x8x128xf32> to vector<8x128xf32>
    %14 = vector.shape_cast %11 : vector<8x128xf32> to vector<1x8x128xf32>
    tpu.vector_store %arg4[%c0_7, %c0_8, %c0_9], %14 {strides = array<i32>} : memref<1x8x128xf32, #tpu.memory_space<vmem>>, vector<1x8x128xf32>,
    %c0_10 = arith.constant 0 : index
    %c0_11 = arith.constant 0 : index
    %c0_12 = arith.constant 0 : index
    %15 = vector.load %arg5[%c0_10, %c0_11, %c0_12] : memref<1x8x128xf32, #tpu.memory_space<vmem>>, vector<1x8x128xf32>
    %16 = vector.shape_cast %15 : vector<1x8x128xf32> to vector<8x128xf32>
    %17 = arith.mulf %5, %5 : vector<2x8x128xf32>
    %cst_13 = arith.constant dense<0.000000e+00> : vector<8x128xf32>
    %18 = vector.multi_reduction <add>, %17, %cst_13 [0] : vector<2x8x128xf32> to vector<8x128xf32>
    %19 = arith.addf %16, %18 : vector<8x128xf32>
    %c0_14 = arith.constant 0 : index
    %c0_15 = arith.constant 0 : index
    %c0_16 = arith.constant 0 : index
    %20 = vector.load %arg5[%c0_14, %c0_15, %c0_16] : memref<1x8x128xf32, #tpu.memory_space<vmem>>, vector<1x8x128xf32>
    %21 = vector.shape_cast %20 : vector<1x8x128xf32> to vector<8x128xf32>
    %22 = vector.shape_cast %19 : vector<8x128xf32> to vector<1x8x128xf32>
    tpu.vector_store %arg5[%c0_14, %c0_15, %c0_16], %22 {strides = array<i32>} : memref<1x8x128xf32, #tpu.memory_space<vmem>>, vector<1x8x128xf32>,
    %c0_17 = arith.constant 0 : index
    %c0_18 = arith.constant 0 : index
    %c0_19 = arith.constant 0 : index
    %23 = vector.load %arg6[%c0_17, %c0_18, %c0_19] : memref<1x8x128xf32, #tpu.memory_space<vmem>>, vector<1x8x128xf32>
    %24 = vector.shape_cast %23 : vector<1x8x128xf32> to vector<8x128xf32>
    %25 = arith.mulf %6, %6 : vector<2x8x128xf32>
    %cst_20 = arith.constant dense<0.000000e+00> : vector<8x128xf32>
    %26 = vector.multi_reduction <add>, %25, %cst_20 [0] : vector<2x8x128xf32> to vector<8x128xf32>
    %27 = arith.addf %24, %26 : vector<8x128xf32>
    %c0_21 = arith.constant 0 : index
    %c0_22 = arith.constant 0 : index
    %c0_23 = arith.constant 0 : index
    %28 = vector.load %arg6[%c0_21, %c0_22, %c0_23] : memref<1x8x128xf32, #tpu.memory_space<vmem>>, vector<1x8x128xf32>
    %29 = vector.shape_cast %28 : vector<1x8x128xf32> to vector<8x128xf32>
    %30 = vector.shape_cast %27 : vector<8x128xf32> to vector<1x8x128xf32>
    tpu.vector_store %arg6[%c0_21, %c0_22, %c0_23], %30 {strides = array<i32>} : memref<1x8x128xf32, #tpu.memory_space<vmem>>, vector<1x8x128xf32>,
    return
  }
  func.func @transform_0(%arg0: i32, %arg1: i32) -> (i32, i32) {
    %c1_i32 = arith.constant 1 : i32
    %0 = arith.muli %arg0, %c1_i32 : i32
    %1 = arith.addi %0, %arg1 : i32
    %c0_i32 = arith.constant 0 : i32
    %2 = arith.minsi %1, %c0_i32 : i32
    %c0_i32_0 = arith.constant 0 : i32
    %c0_i32_1 = arith.constant 0 : i32
    return %2, %c0_i32_0 : i32, i32
  }
  func.func @transform_1(%arg0: i32, %arg1: i32) -> (i32, i32) {
    %c1_i32 = arith.constant 1 : i32
    %0 = arith.muli %arg0, %c1_i32 : i32
    %1 = arith.addi %0, %arg1 : i32
    %c0_i32 = arith.constant 0 : i32
    %2 = arith.minsi %1, %c0_i32 : i32
    %c0_i32_0 = arith.constant 0 : i32
    %c0_i32_1 = arith.constant 0 : i32
    return %2, %c0_i32_0 : i32, i32
  }
  func.func @transform_2(%arg0: i32, %arg1: i32) -> (i32, i32, i32) {
    %c0_i32 = arith.constant 0 : i32
    %c0_i32_0 = arith.constant 0 : i32
    %c0_i32_1 = arith.constant 0 : i32
    return %arg0, %c0_i32, %c0_i32_0 : i32, i32, i32
  }
  func.func @transform_3(%arg0: i32, %arg1: i32) -> (i32, i32, i32) {
    %c0_i32 = arith.constant 0 : i32
    %c0_i32_0 = arith.constant 0 : i32
    %c0_i32_1 = arith.constant 0 : i32
    return %arg0, %c0_i32, %c0_i32_0 : i32, i32, i32
  }
  func.func @transform_4(%arg0: i32, %arg1: i32) -> (i32, i32, i32) {
    %c0_i32 = arith.constant 0 : i32
    %c0_i32_0 = arith.constant 0 : i32
    %c0_i32_1 = arith.constant 0 : i32
    return %arg0, %c0_i32, %c0_i32_0 : i32, i32, i32
  }
}

</mosaic_0001>

<bundles_post_ra>
// kernel: tpu_custom_call.1
= control target key start
LH: loop header
LB: loop body
LE: loop exit
PB: predicated region body
PF: predicated region fallthrough
CT: control target
= control target key end

     0   :  { %10 = vsyncpa [#allocation3], 0  ;;  %s303_s0 = inlined_call_operand.hbm [shape: f32[16,128], index: 0, kind: input, shape index: {}]   ;;  %s304_s1 = inlined_call_operand.hbm [shape: f32[16,128], index: 1, kind: input, shape index: {}]   ;;  %s305_s2 = inlined_call_operand.hbm [shape: f32[1,8,128], index: 2, kind: output, shape index: {0}]   ;;  %s306_s3 = inlined_call_operand.hbm [shape: f32[1,8,128], index: 3, kind: output, shape index: {1}]   ;;  %s307_s4 = inlined_call_operand.hbm [shape: f32[1,8,128], index: 4, kind: output, shape index: {2}]  }
   0x1   :  { %11 = vsyncpa [#allocation6], 0 }
   0x2   :  { %12 = vsyncpa [#allocation4], 0 }
   0x3   :  { %13 = vsyncpa [#allocation9], 0  ;;  %s256_s15 = smov [#allocation2]  }
   0x4   :  { %s25_s16 = sshll.u32 %s256_s15, 4  ;;  %s26_s16 = int_to_ptr.vmem [resolvable:$true] %s25_s16 }
   0x5   :  { %s156_s17 = scalar_lea.vmem %s26_s16, 256  ;;  %p161_p1 = scmp.lt.s32.totalorder %s26_s16, %s26_s16 }
   0x6   :  { %p157_p0 = scmp.ne.s32.totalorder %s26_s16, %s156_s17  ;;  %p162_p2 = scmp.lt.s32.totalorder %s156_s17, %s156_s17 }
   0x8   :  { %p163_p3 = por %p162_p2, %p161_p1 }
   0xa   :  { %p164_p4 = pnand %p163_p3, %p157_p0 }
   0xc   :  { %167 = shalt.err (!%p164_p4)
}
   0xd   :  { %s257_s18 = smov 128   ;;  %s258_s19 = smov 8  }
   0xe   :  { %31 = dma.hbm_to_vmem [thread:$0]  %s303_s0, 256, %s26_s16, [#allocation3], %s257_s18, %s257_s18, %s258_s19  }
   0xf   :  { %s259_s22 = smov [#allocation5]  }
  0x10   :  { %s43_s23 = sshll.u32 %s259_s22, 4  ;;  %s44_s23 = int_to_ptr.vmem [resolvable:$true] %s43_s23 }
  0x11   :  { %s176_s24 = scalar_lea.vmem %s44_s23, 256  ;;  %p181_p6 = scmp.lt.s32.totalorder %s44_s23, %s44_s23 }
  0x12   :  { %p177_p5 = scmp.ne.s32.totalorder %s44_s23, %s176_s24  ;;  %p182_p7 = scmp.lt.s32.totalorder %s176_s24, %s176_s24 }
  0x14   :  { %p183_p8 = por %p182_p7, %p181_p6 }
  0x16   :  { %p184_p9 = pnand %p183_p8, %p177_p5 }
  0x18   :  { %187 = shalt.err (!%p184_p9)
}
  0x19   :  { %49 = dma.hbm_to_vmem [thread:$0]  %s304_s1, 256, %s44_s23, [#allocation6], %s257_s18, %s257_s18, %s258_s19  }
  0x1a   :  { %248 = dma.done.wait [#allocation3], 256  }
  0x1b   :  { %249 = vsyncadd [#allocation3], 4294967040 }
  0x1c   :  { %250 = dma.done.wait [#allocation6], 256  }
  0x1d   :  { %251 = vsyncadd [#allocation6], 4294967040  ;;  %v71_v0 = vld [vmem:[#allocation2] sm:$0xff]  ;;  %v72_v1 = vld [vmem:[#allocation2 + $0x8] sm:$0xff]  ;;  %s260_s0 = smov [#allocation8]   ;;  %s261_s28 = smov [#allocation7]  }
  0x1e   :  { %v73_v2 = vld [vmem:[#allocation5] sm:$0xff]  ;;  %v82_v3 = vmul.f32 %v71_v0, %v71_v0  ;;  %v83_v4 = vmul.f32 %v72_v1, %v72_v1  ;;  %v74_v5 = vld [vmem:[#allocation5 + $0x8] sm:$0xff]  ;;  %s109_s27 = sshll.u32 %s260_s0, 4  ;;  %s99_s29 = sshll.u32 %s261_s28, 4  ;;  %s110_s27 = int_to_ptr.vmem [resolvable:$true] %s109_s27  ;;  %s100_s29 = int_to_ptr.vmem [resolvable:$true] %s99_s29 }
  0x1f   :  { %v76_v6 = vmul.f32 %v73_v2, %v71_v0  ;;  %v88_v7 = vmul.f32 %v73_v2, %v73_v2  ;;  %v77_v8 = vmul.f32 %v74_v5, %v72_v1  ;;  %v89_v9 = vmul.f32 %v74_v5, %v74_v5  ;;  %s262_s1 = smov [#allocation10]   ;;  %s188_s5 = scalar_lea.vmem %s110_s27, 128 }
  0x20   :  { %v84_v10 = vadd.f32 %v83_v4, %v82_v3  ;;  %s119_s30 = sshll.u32 %s262_s1, 4  ;;  %p189_p10 = scmp.ne.s32.totalorder %s110_s27, %s188_s5  ;;  %s120_s30 = int_to_ptr.vmem [resolvable:$true] %s119_s30 }
  0x21   :  { %v78_v11 = vadd.f32 %v77_v8, %v76_v6  ;;  %v90_v12 = vadd.f32 %v89_v9, %v88_v7  ;;  %p193_p11 = scmp.lt.s32.totalorder %s110_s27, %s110_s27  ;;  %p194_p12 = scmp.lt.s32.totalorder %s188_s5, %s188_s5 }
  0x22   :  { %86 = vst [vmem:[#allocation8] sm:$0xff] %v84_v10 }
  0x23   :  { %80 = vst [vmem:[#allocation7] sm:$0xff] %v78_v11  ;;  %92 = vst [vmem:[#allocation10] sm:$0xff] %v90_v12  ;;  %p195_p13 = por %p194_p12, %p193_p11 }
  0x25   :  { %p196_p0 = pnand %p195_p13, %p189_p10 }
  0x27   :  { %199 = shalt.err (!%p196_p0)
}
  0x28   :  { %112 = dma.vmem_to_hbm [thread:$0]  %s110_s27, 128, %s306_s3, [#allocation9]  }
  0x29   :  { %s208_s8 = scalar_lea.vmem %s100_s29, 128  ;;  %p213_p2 = scmp.lt.s32.totalorder %s100_s29, %s100_s29 }
  0x2a   :  { %p209_p1 = scmp.ne.s32.totalorder %s100_s29, %s208_s8  ;;  %p214_p3 = scmp.lt.s32.totalorder %s208_s8, %s208_s8 }
  0x2c   :  { %p215_p4 = por %p214_p3, %p213_p2 }
  0x2e   :  { %p216_p5 = pnand %p215_p4, %p209_p1 }
  0x30   :  { %219 = shalt.err (!%p216_p5)
}
  0x31   :  { %102 = dma.vmem_to_hbm [thread:$0]  %s100_s29, 128, %s305_s2, [#allocation4]  }
  0x32   :  { %s228_s11 = scalar_lea.vmem %s120_s30, 128  ;;  %p233_p7 = scmp.lt.s32.totalorder %s120_s30, %s120_s30 }
  0x33   :  { %p229_p6 = scmp.ne.s32.totalorder %s120_s30, %s228_s11  ;;  %p234_p8 = scmp.lt.s32.totalorder %s228_s11, %s228_s11 }
  0x35   :  { %p235_p9 = por %p234_p8, %p233_p7 }
  0x37   :  { %p236_p10 = pnand %p235_p9, %p229_p6 }
  0x39   :  { %239 = shalt.err (!%p236_p10)
}
  0x3a   :  { %122 = dma.vmem_to_hbm [thread:$0]  %s120_s30, 128, %s307_s4, [#allocation9]  }
  0x3b   :  { %252 = dma.done.wait [#allocation4], 128  }
  0x3c   :  { %253 = vsyncadd [#allocation4], 4294967168 }
  0x3d   :  { %254 = dma.done.wait [#allocation9], 256  }
  0x3e   :  { %255 = vsyncadd [#allocation9], 4294967040 }
  0x3f   :  { %132 = vsyncpa [#allocation3], 1 }
  0x40   :  { %133 = vsyncpa [#allocation6], 1 }
  0x41   :  { %134 = vsyncpa [#allocation4], 1 }
  0x42   :  { %135 = vsyncpa [#allocation9], 1 }

</bundles_post_ra>
